<compile_context>
chip_gen: v7x
topology: tpu7x:2x2x1
jax: 0.10.0
libtpu: 0.0.40
codegen_flags: <defaults>
</compile_context>

<pallas_src>
import functools

import jax
import jax.numpy as jnp
from jax.experimental import pallas as pl
from jax.experimental.pallas import tpu as pltpu


def _cdiv(a, b):
    return -(-a // b)


def _round_up(x, m):
    return ((x + m - 1) // m) * m


def _gap_kernel_single(x_ref, o_ref, *, inv_spatial):
    """Single spatial tile: tile covers the full (true) spatial extent."""
    s = x_ref.shape[-1]
    n_full = s // 128
    rem = s - n_full * 128

    total = None
    if n_full:
        # Lane-dense VPU accumulation over 128-wide static slices, then one
        # cross-lane (XLU) reduce.
        partial = None
        for j in range(n_full):
            v = x_ref[:, j * 128:(j + 1) * 128].astype(jnp.float32)
            partial = v if partial is None else partial + v
        total = jnp.sum(partial, axis=-1, keepdims=True)
    if rem:
        t_rem = jnp.sum(
            x_ref[:, n_full * 128:].astype(jnp.float32), axis=-1, keepdims=True
        )
        total = t_rem if total is None else total + t_rem

    o_ref[...] = (total * inv_spatial).astype(o_ref.dtype)


def _gap_kernel_multi(x_ref, o_ref, acc_ref, *, inv_spatial, spatial, tile_s):
    """Multiple spatial tiles: (tile_r, 128) f32 accumulator, masked tail."""
    k = pl.program_id(1)

    @pl.when(k == 0)
    def _():
        acc_ref[...] = jnp.zeros_like(acc_ref)

    needs_mask = (spatial % tile_s) != 0   # static Python bool
    base = k * tile_s                      # traced scalar
    n_slices = tile_s // 128               # tile_s is a multiple of 128 here

    partial = None
    for j in range(n_slices):
        v = x_ref[:, j * 128:(j + 1) * 128].astype(jnp.float32)
        if needs_mask:
            lane = jax.lax.broadcasted_iota(jnp.int32, v.shape, 1) + (base + j * 128)
            v = jnp.where(lane < spatial, v, 0.0)
        partial = v if partial is None else partial + v
    acc_ref[...] += partial

    @pl.when(k == pl.num_programs(1) - 1)
    def _():
        o_ref[...] = (
            jnp.sum(acc_ref[...], axis=-1, keepdims=True) * inv_spatial
        ).astype(o_ref.dtype)


def _select_row_tile(rows, sub, lane_bytes, target_tile_bytes, max_tile_r):
    """Pick a row tile that (a) respects sublane packing, (b) keeps one input
    buffer near the byte budget, (c) yields >= 2 row tiles when possible so
    the 'parallel' row axis can shard across v7x's two TensorCores."""
    budget = max(sub, (target_tile_bytes // max(lane_bytes, 1)) // sub * sub)
    budget = min(budget, max_tile_r)
    if rows <= budget:
        if rows >= 2 * sub:
            return _round_up(_cdiv(rows, 2), sub)   # >= 2 row tiles
        return rows                                  # block == full dim (legal)
    return budget


@functools.partial(
    jax.jit, static_argnames=("max_tile_s", "max_tile_r", "target_tile_bytes")
)
def global_avg_pool_pallas(x, *, max_tile_s=4096, max_tile_r=1024,
                           target_tile_bytes=8 * 1024 * 1024):
    """fn wrapped by Lambda: x (N, C, H, W) -> (N, C), mean over H and W."""
    n, c, h, w = x.shape
    rows = n * c
    spatial = h * w
    itemsize = jnp.dtype(x.dtype).itemsize
    sub = max(8, 32 // itemsize)                      # sublane packing granule

    out_dtype = x.dtype if jnp.issubdtype(x.dtype, jnp.floating) else jnp.float32
    inv_spatial = 1.0 / float(spatial)

    x2d = x.reshape(rows, spatial)                    # contiguous, free reshape

    single_tile = spatial <= max_tile_s
    if single_tile:
        tile_s = spatial                              # full-extent lane block
        k_tiles = 1
    else:
        tile_s = max_tile_s - (max_tile_s % 128)      # multiple of 128
        k_tiles = _cdiv(spatial, tile_s)

    lane_bytes = _round_up(tile_s, 128) * itemsize    # VMEM lane padding
    tile_r = _select_row_tile(rows, sub, lane_bytes, target_tile_bytes, max_tile_r)
    row_tiles = _cdiv(rows, tile_r)

    cost = pl.CostEstimate(
        flops=rows * spatial,
        transcendentals=0,
        bytes_accessed=rows * spatial * itemsize
        + rows * jnp.dtype(out_dtype).itemsize,
    )

    if single_tile:
        kernel = functools.partial(_gap_kernel_single, inv_spatial=inv_spatial)
        out = pl.pallas_call(
            kernel,
            out_shape=jax.ShapeDtypeStruct((rows, 1), out_dtype),
            grid=(row_tiles,),
            in_specs=[pl.BlockSpec((tile_r, tile_s), lambda i: (i, 0))],
            out_specs=pl.BlockSpec((tile_r, 1), lambda i: (i, 0)),
            compiler_params=pltpu.CompilerParams(
                dimension_semantics=("parallel",),
                vmem_limit_bytes=48 * 1024 * 1024,
            ),
            cost_estimate=cost,
        )(x2d)
    else:
        kernel = functools.partial(
            _gap_kernel_multi,
            inv_spatial=inv_spatial,
            spatial=spatial,
            tile_s=tile_s,
        )
        out = pl.pallas_call(
            kernel,
            out_shape=jax.ShapeDtypeStruct((rows, 1), out_dtype),
            grid=(row_tiles, k_tiles),
            in_specs=[pl.BlockSpec((tile_r, tile_s), lambda i, k: (i, k))],
            out_specs=pl.BlockSpec((tile_r, 1), lambda i, k: (i, 0)),
            scratch_shapes=[pltpu.VMEM((tile_r, 128), jnp.float32)],
            compiler_params=pltpu.CompilerParams(
                dimension_semantics=("parallel", "arbitrary"),
                vmem_limit_bytes=48 * 1024 * 1024,
            ),
            cost_estimate=cost,
        )(x2d)

    # Tiny epilogue fused in the same jit: no row slicing needed (out is
    # exactly (rows, 1)) and the cast already happened in-kernel.
    return out[:, 0].reshape(n, c)


class Lambda:
    """JAX/Pallas equivalent of mdistiller's Lambda(nn.Module)."""

    def __init__(self, fn):
        self.fn = fn

    def __call__(self, *args, **kwargs):
        return self.fn(*args, **kwargs)


if __name__ == "__main__":
    key = jax.random.PRNGKey(0)
    module = Lambda(global_avg_pool_pallas)

    # Aligned NCHW feature map: single-spatial-tile fast path.
    x = jax.random.normal(key, (2, 4, 16, 16), dtype=jnp.float32)
    y = jax.block_until_ready(module(x))
    ref = jnp.mean(x, axis=(2, 3))
    assert y.shape == (2, 4), y.shape
    assert jnp.allclose(y, ref, atol=1e-5, rtol=1e-5), "mismatch vs reference"

    # Unaligned rows (6) and spatial (49): full-extent lane block + partial
    # row edge block (no jnp.pad anywhere).
    x2 = jax.random.normal(key, (2, 3, 7, 7), dtype=jnp.float32)
    y2 = jax.block_until_ready(module(x2))
    ref2 = jnp.mean(x2, axis=(2, 3))
    assert y2.shape == (2, 3), y2.shape
    assert jnp.allclose(y2, ref2, atol=1e-5, rtol=1e-5), "mismatch (unaligned)"

    # Force the multi-k-tile path with a masked tail (spatial=144, tile_s=128).
    x3 = jax.random.normal(key, (2, 4, 12, 12), dtype=jnp.float32)
    y3 = jax.block_until_ready(global_avg_pool_pallas(x3, max_tile_s=128))
    ref3 = jnp.mean(x3, axis=(2, 3))
    assert jnp.allclose(y3, ref3, atol=1e-5, rtol=1e-5), "mismatch (multi-tile)"

    # bf16 input: bf16 bytes through the DMA, f32 accumulation in-kernel.
    x4 = jax.random.normal(key, (2, 4, 16, 16), dtype=jnp.bfloat16)
    y4 = jax.block_until_ready(module(x4))
    ref4 = jnp.mean(x4.astype(jnp.float32), axis=(2, 3))
    assert y4.dtype == jnp.bfloat16
    assert jnp.allclose(y4.astype(jnp.float32), ref4, atol=2e-2, rtol=2e-2), \
        "mismatch (bf16)"

    print("KERNEL_OK")
</pallas_src>

<mosaic_0001>
module attributes {stable_mosaic.version = 11 : i64} {
  func.func @_gap_kernel_single(%arg0: i32, %arg1: memref<8x256xf32, #tpu.memory_space<vmem>>, %arg2: memref<8x1xf32, #tpu.memory_space<vmem>>) attributes {dimension_semantics = [#tpu.dimension_semantics<parallel>], iteration_bounds = array<i64: 1>, scalar_prefetch = 0 : i64, scratch_operands = 0 : i64, tpu.core_type = #tpu.core_type<tc>, window_params = [{transform_indices = @transform_0, window_bounds = array<i64: 8, 256>}, {transform_indices = @transform_1, window_bounds = array<i64: 8, 1>}]} {
    %c0 = arith.constant 0 : index
    %c0_0 = arith.constant 0 : index
    %0 = vector.load %arg1[%c0, %c0_0] : memref<8x256xf32, #tpu.memory_space<vmem>>, vector<8x128xf32>
    %c0_1 = arith.constant 0 : index
    %c128 = arith.constant 128 : index
    %1 = vector.load %arg1[%c0_1, %c128] : memref<8x256xf32, #tpu.memory_space<vmem>>, vector<8x128xf32>
    %2 = arith.addf %0, %1 : vector<8x128xf32>
    %cst = arith.constant dense<0.000000e+00> : vector<8xf32>
    %3 = vector.multi_reduction <add>, %2, %cst [1] : vector<8x128xf32> to vector<8xf32>
    %4 = vector.shape_cast %3 : vector<8xf32> to vector<8x1xf32>
    %cst_2 = arith.constant 3.906250e-03 : f32
    %5 = vector.broadcast %cst_2 : f32 to vector<8x1xf32>
    %6 = arith.mulf %4, %5 : vector<8x1xf32>
    %c0_3 = arith.constant 0 : index
    %c0_4 = arith.constant 0 : index
    %7 = vector.load %arg2[%c0_3, %c0_4] : memref<8x1xf32, #tpu.memory_space<vmem>>, vector<8x1xf32>
    tpu.vector_store %arg2[%c0_3, %c0_4], %6 {strides = array<i32>} : memref<8x1xf32, #tpu.memory_space<vmem>>, vector<8x1xf32>,
    return
  }
  func.func @transform_0(%arg0: i32) -> (i32, i32) {
    %c0_i32 = arith.constant 0 : i32
    %c0_i32_0 = arith.constant 0 : i32
    return %arg0, %c0_i32 : i32, i32
  }
  func.func @transform_1(%arg0: i32) -> (i32, i32) {
    %c0_i32 = arith.constant 0 : i32
    %c0_i32_0 = arith.constant 0 : i32
    return %arg0, %c0_i32 : i32, i32
  }
}

</mosaic_0001>

<bundles_post_ra>
// kernel: squeeze.1
= control target key start
LH: loop header
LB: loop body
LE: loop exit
PB: predicated region body
PF: predicated region fallthrough
CT: control target
= control target key end

     0   :  { %s85_s0 = inlined_call_operand.vmem [shape: f32[8], index: 0, kind: input, shape index: {}]   ;;  %s86_s1 = inlined_call_operand.hbm [shape: f32[2,4], index: 1, kind: output, shape index: {}]  }
   0x1   :  { %v5_v0 = vld [vmem:[%s85_s0] sm:$0x1] }
   0x2   :  { %2 = vsyncpa [#allocation1], 0  ;;  %6 = vst [vmem:[#allocation3] sm:$0x1] %v5_v0  ;;  %vm8_vm0 = vcmask 31744   ;;  %s58_s0 = smov 124  }
   0x3   :  { %s59_s8 = smov [#allocation0]  }
   0x4   :  { %s26_s9 = sshll.u32 %s59_s8, 4  ;;  %s27_s9 = int_to_ptr.vmem [resolvable:$true] %s26_s9 }
   0x5   :  { %s34_s10 = scalar_lea.vmem %s27_s9, 32  ;;  %p39_p1 = scmp.lt.s32.totalorder %s27_s9, %s27_s9 }
   0x6   :  { %p35_p0 = scmp.ne.s32.totalorder %s27_s9, %s34_s10  ;;  %p40_p2 = scmp.lt.s32.totalorder %s34_s10, %s34_s10 }
   0x8   :  { %p41_p3 = por %p40_p2, %p39_p1 }
   0x9   :  { %v10_v1 = vld [vmem:[#allocation3] sm:$0x1]  }
   0xa   :  { %v7_v2 = vld [vmem:[#allocation3] sm:$0x1]   ;;  %11 = vrot.lane.b32.xlu0 %v10_v1, %s58_s0  ;;  %p42_p4 = pnand %p41_p3, %p35_p0 }
   0xb   :  { %9 = vst.msk [vmem:[#allocation2] sm:$0x1] %vm8_vm0, %v7_v2  }
  0x7c   :  { %v12_v3 = vpop.permute.xlu0 %11  }
  0x7d   :  { %15 = vst.msk [vmem:[#allocation2 + $0x1] sm:$0x1] %vm8_vm0, %v12_v3  }
  0x84   :  { %v19_v4 = vld [vmem:[#allocation2] sm:$0x3] }
  0x85   :  { %21 = vst [vmem:[#allocation0] sm:$0x3] %v19_v4 }
  0x86   :  { %45 = shalt.err (!%p42_p4)
}
  0x87   :  { %s46_s13 = scalar_lea.hbm %s86_s1, 32 }
  0x88   :  { %p47_p5 = scmp.ne.s32.totalorder %s86_s1, %s46_s13  ;;  %p50_p6 = scmp.lt.u32.totalorder %s46_s13, %s86_s1 }
  0x8a   :  { %p52_p7 = pnand %p50_p6, %p47_p5 }
  0x8c   :  { %55 = shalt.err (!%p52_p7)
}
  0x8d   :  { %29 = dma.vmem_to_hbm [thread:$0]  %s27_s9, 32, %s86_s1, [#allocation1]  }
  0x8e   :  { %56 = dma.done.wait [#allocation1], 32  }
  0x8f   :  { %57 = vsyncadd [#allocation1], 4294967264 }
  0x90   :  { %31 = vsyncpa [#allocation1], 1 }

// kernel: global_avg_pool_pallas.1
= control target key start
LH: loop header
LB: loop body
LE: loop exit
PB: predicated region body
PF: predicated region fallthrough
CT: control target
= control target key end

     0   :  { %vm14_vm0 = vcmask 7168   ;;  %s39_s0 = inlined_call_operand.vmem [shape: f32[8,256], index: 0, kind: input, shape index: {}]   ;;  %s40_s1 = inlined_call_operand.vmem [shape: f32[8,1], index: 1, kind: output, shape index: {}]  }
   0x1   :  { %v8_v0 = vld [vmem:[%s39_s0] sm:$0xff]  ;;  %v9_v1 = vld [vmem:[%s39_s0 + $0x8] sm:$0xff] }
   0x2   :  { %v10_v2 = vadd.f32 %v9_v1, %v8_v0 }
   0x4   :  { %11 = vadd.xlane.f32.xlu0 %v10_v2 }
  0x91   :  { %v12_v3 = vpop.xlane.xlu0 %11 }
  0x92   :  { %v13_v4 = vmul.f32 0.00390625, %v12_v3 }
  0x94   :  { %15 = vst.msk [vmem:[%s40_s1] sm:$0xff] %vm14_vm0, %v13_v4 }

</bundles_post_ra>
